<compile_context>
chip_gen: v7x
topology: tpu7x:2x2x1
jax: 0.10.0
libtpu: 0.0.40
codegen_flags: <defaults>
</compile_context>

<pallas_src>
from functools import partial

import jax
import jax.numpy as jnp
from jax.experimental import pallas as pl
from jax.experimental.pallas import tpu as pltpu


def hnn_kernel(x_ref, w1t_ref, b1_ref, w1out_ref, out_ref):
    x = x_ref[...]
    w1t = w1t_ref[...]
    if x.dtype != w1t.dtype:
        # Cast the tile in-kernel (VPU, hidden under MXU/DMA); x stays f32 in HBM.
        x = x.astype(w1t.dtype)
    # z = x @ W1^T + b1 -> [TB, H]; W1 was pre-transposed to [D, H] so this is a
    # canonical [M,K] x [K,N] contraction.
    z = jnp.dot(x, w1t, preferred_element_type=jnp.float32) + b1_ref[...]
    a = jnp.tanh(z)        # EUP, f32 (safe on v5e; hidden under MXU on v6e/v7x)
    s = 1.0 - a * a        # VPU, f32
    # out = s @ W1_out -> [TB, D]; w2 scaling + symplectic permute/negate were
    # folded into W1_out in the wrapper, so nothing else to do here.
    g = jnp.dot(s.astype(w1out_ref.dtype), w1out_ref[...],
                preferred_element_type=jnp.float32)
    out_ref[...] = g.astype(out_ref.dtype)


def hnn_prepare_weights(w1, b1, w2, *, use_bf16=True):
    """One-time weight folding.  Call once at init (or under jit).

    w1: [H, D] (nn.Linear(D, H).weight), b1: [1, H] or [H], w2: [1, H] or [H]
    Returns (W1_T [D, H], b1 [1, H] f32, W1_out [H, D]).
    """
    H, D = w1.shape
    n = D // 2
    w1_f32 = w1.astype(jnp.float32)
    w2_col = w2.astype(jnp.float32).reshape(H, 1)           # [H, 1]
    w1_scaled = w2_col * w1_f32                              # [H, D] = w2.T * W1
    # out = gradH with columns swapped/negated -> fold into the output weight:
    #   out = (1 - tanh(z)^2) @ concat([(w2.T*W1)[:, n:], -(w2.T*W1)[:, :n]], 1)
    w1_out = jnp.concatenate([w1_scaled[:, n:], -w1_scaled[:, :n]], axis=1)

    mxu_dtype = jnp.bfloat16 if use_bf16 else jnp.float32
    w1_t = w1_f32.T.astype(mxu_dtype)                        # [D, H] canonical RHS
    w1_out = w1_out.astype(mxu_dtype)                        # [H, D]
    b1_f32 = b1.astype(jnp.float32).reshape(1, H)
    return w1_t, b1_f32, w1_out


def _pick_batch_tile(B, block_b):
    """Batch tile: multiple of 8 (sublane) or the full batch; keep >= 4 grid
    steps when the batch allows it (>= 2 per TensorCore on v7x megacore)."""
    if B <= 8:
        return B                       # full-extent block is always legal
    tb = min(block_b, B)
    tb = max(8, (tb // 8) * 8)
    while tb > 128 and pl.cdiv(B, tb) < 4:
        tb //= 2
    return tb


@partial(jax.jit, static_argnames=("block_b", "out_dtype"))
def hnn_forward_prepared(x, w1_t, b1, w1_out, *, block_b=512, out_dtype=None):
    """HNN forward given pre-folded weights from hnn_prepare_weights."""
    B, D = x.shape
    H = w1_t.shape[1]
    out_dtype = x.dtype if out_dtype is None else out_dtype

    tb = _pick_batch_tile(B, block_b)
    grid = (pl.cdiv(B, tb),)           # ragged last block: no pad, no slice

    w_isz = jnp.dtype(w1_t.dtype).itemsize
    cost = pl.CostEstimate(
        flops=4 * B * D * H,                                    # two matmuls
        transcendentals=B * H,                                  # tanh
        bytes_accessed=(B * D * jnp.dtype(x.dtype).itemsize     # x (stays f32)
                        + B * D * jnp.dtype(out_dtype).itemsize  # out
                        + 2 * H * D * w_isz + H * 4),            # W1_T, W1_out, b1
    )

    return pl.pallas_call(
        hnn_kernel,
        out_shape=jax.ShapeDtypeStruct((B, D), out_dtype),
        grid=grid,
        in_specs=[
            pl.BlockSpec((tb, D), lambda i: (i, 0)),   # x tile    (pipelined)
            pl.BlockSpec((D, H), lambda i: (0, 0)),    # W1^T      (VMEM-resident)
            pl.BlockSpec((1, H), lambda i: (0, 0)),    # b1        (VMEM-resident)
            pl.BlockSpec((H, D), lambda i: (0, 0)),    # W1_out    (VMEM-resident)
        ],
        out_specs=pl.BlockSpec((tb, D), lambda i: (i, 0)),
        compiler_params=pltpu.CompilerParams(
            dimension_semantics=("parallel",)),        # megacore sharding on v7x
        cost_estimate=cost,
    )(x, w1_t, b1, w1_out)


def hnn_forward(x, w1, b1, w2, *, use_bf16=True, block_b=512, out_dtype=None):
    """Convenience wrapper: fold weights then run the Pallas kernel.

    For repeated calls, do the folding once via hnn_prepare_weights and call
    hnn_forward_prepared directly.
    """
    w1_t, b1_f, w1_out = hnn_prepare_weights(w1, b1, w2, use_bf16=use_bf16)
    return hnn_forward_prepared(x, w1_t, b1_f, w1_out,
                                block_b=block_b, out_dtype=out_dtype)


def hnn_reference(x, w1, b1, w2, b2):
    """Pure-JAX reference: autodiff of H(x).sum(), then symplectic swap."""
    def H_sum(xx):
        z = xx @ w1.T + b1            # [B, H]
        h = jnp.tanh(z) @ w2.T + b2   # [B, 1]
        return h.sum()

    gradH = jax.grad(H_sum)(x)        # [B, D]
    n = x.shape[1] // 2
    return jnp.concatenate([gradH[:, n:], -gradH[:, :n]], axis=1).astype(x.dtype)


if __name__ == "__main__":
    key = jax.random.PRNGKey(0)
    kx, kw1, kb1, kw2, kb2 = jax.random.split(key, 5)

    # Small demo shapes: x in R^{B x D} with D = 2*n, hidden width H.
    B, D, H = 16, 8, 32

    x = jax.random.normal(kx, (B, D), dtype=jnp.float32)
    # Synthetic "net" parameters: nn.Linear(D, H) -> Tanh -> nn.Linear(H, 1)
    w1 = jax.random.normal(kw1, (H, D), dtype=jnp.float32) * (1.0 / jnp.sqrt(D))
    b1 = jax.random.normal(kb1, (1, H), dtype=jnp.float32) * 0.1
    w2 = jax.random.normal(kw2, (1, H), dtype=jnp.float32) * (1.0 / jnp.sqrt(H))
    b2 = jax.random.normal(kb2, (1,), dtype=jnp.float32) * 0.1  # no effect on gradH

    ref = hnn_reference(x, w1, b1, w2, b2)

    # Exact f32 MXU path.
    out_f32 = jax.block_until_ready(hnn_forward(x, w1, b1, w2, use_bf16=False))
    assert out_f32.shape == (B, D) and out_f32.dtype == x.dtype
    assert jnp.allclose(out_f32, ref, atol=1e-4, rtol=1e-4), "Pallas HNN (f32) mismatch"

    # Default bf16-operand MXU path (f32 accumulation; looser, expected tolerance).
    out_bf16 = jax.block_until_ready(hnn_forward(x, w1, b1, w2))
    assert jnp.allclose(out_bf16, ref, atol=5e-2, rtol=5e-2), "Pallas HNN (bf16) mismatch"

    # Multi-tile grid with a ragged final block (no wrapper-side pad / slice).
    B2 = 20
    x2 = jax.random.normal(kx, (B2, D), dtype=jnp.float32)
    ref2 = hnn_reference(x2, w1, b1, w2, b2)
    out2 = jax.block_until_ready(
        hnn_forward(x2, w1, b1, w2, use_bf16=False, block_b=8))
    assert out2.shape == (B2, D)
    assert jnp.allclose(out2, ref2, atol=1e-4, rtol=1e-4), "Pallas HNN (ragged batch) mismatch"

    print("KERNEL_OK")
</pallas_src>

<mosaic_0001>
module attributes {stable_mosaic.version = 11 : i64} {
  func.func @hnn_kernel(%arg0: i32, %arg1: memref<16x8xf32, #tpu.memory_space<vmem>>, %arg2: memref<8x32xf32, #tpu.memory_space<vmem>>, %arg3: memref<1x32xf32, #tpu.memory_space<vmem>>, %arg4: memref<32x8xf32, #tpu.memory_space<vmem>>, %arg5: memref<16x8xf32, #tpu.memory_space<vmem>>) attributes {dimension_semantics = [#tpu.dimension_semantics<parallel>], iteration_bounds = array<i64: 1>, scalar_prefetch = 0 : i64, scratch_operands = 0 : i64, tpu.core_type = #tpu.core_type<tc>, window_params = [{transform_indices = @transform_0, window_bounds = array<i64: 16, 8>}, {pipeline_mode = #tpu.pipeline_mode<synchronous>, transform_indices = @transform_1, window_bounds = array<i64: 8, 32>}, {pipeline_mode = #tpu.pipeline_mode<synchronous>, transform_indices = @transform_2, window_bounds = array<i64: 1, 32>}, {pipeline_mode = #tpu.pipeline_mode<synchronous>, transform_indices = @transform_3, window_bounds = array<i64: 32, 8>}, {transform_indices = @transform_4, window_bounds = array<i64: 16, 8>}]} {
    %c0 = arith.constant 0 : index
    %c0_0 = arith.constant 0 : index
    %0 = vector.load %arg1[%c0, %c0_0] : memref<16x8xf32, #tpu.memory_space<vmem>>, vector<16x8xf32>
    %c0_1 = arith.constant 0 : index
    %c0_2 = arith.constant 0 : index
    %1 = vector.load %arg2[%c0_1, %c0_2] : memref<8x32xf32, #tpu.memory_space<vmem>>, vector<8x32xf32>
    %cst = arith.constant dense<0.000000e+00> : vector<16x32xf32>
    %2 = tpu.matmul %0, %1, %cst {dimension_numbers = #tpu.dot_dimension_numbers<[1], [0], [0], [1], [0, 0, 1, 1], [], []>} : vector<16x8xf32>, vector<8x32xf32>, vector<16x32xf32> -> vector<16x32xf32>
    %c0_3 = arith.constant 0 : index
    %c0_4 = arith.constant 0 : index
    %3 = vector.load %arg3[%c0_3, %c0_4] : memref<1x32xf32, #tpu.memory_space<vmem>>, vector<1x32xf32>
    %4 = vector.broadcast %3 : vector<1x32xf32> to vector<16x32xf32>
    %5 = arith.addf %2, %4 : vector<16x32xf32>
    %6 = math.tanh %5 : vector<16x32xf32>
    %7 = arith.mulf %6, %6 : vector<16x32xf32>
    %cst_5 = arith.constant 1.000000e+00 : f32
    %8 = vector.broadcast %cst_5 : f32 to vector<16x32xf32>
    %9 = arith.subf %8, %7 : vector<16x32xf32>
    %c0_6 = arith.constant 0 : index
    %c0_7 = arith.constant 0 : index
    %10 = vector.load %arg4[%c0_6, %c0_7] : memref<32x8xf32, #tpu.memory_space<vmem>>, vector<32x8xf32>
    %cst_8 = arith.constant dense<0.000000e+00> : vector<16x8xf32>
    %11 = tpu.matmul %9, %10, %cst_8 {dimension_numbers = #tpu.dot_dimension_numbers<[1], [0], [0], [1], [0, 0, 1, 1], [], []>} : vector<16x32xf32>, vector<32x8xf32>, vector<16x8xf32> -> vector<16x8xf32>
    %c0_9 = arith.constant 0 : index
    %c0_10 = arith.constant 0 : index
    %12 = vector.load %arg5[%c0_9, %c0_10] : memref<16x8xf32, #tpu.memory_space<vmem>>, vector<16x8xf32>
    tpu.vector_store %arg5[%c0_9, %c0_10], %11 {strides = array<i32>} : memref<16x8xf32, #tpu.memory_space<vmem>>, vector<16x8xf32>,
    return
  }
  func.func @transform_0(%arg0: i32) -> (i32, i32) {
    %c0_i32 = arith.constant 0 : i32
    %c0_i32_0 = arith.constant 0 : i32
    return %arg0, %c0_i32 : i32, i32
  }
  func.func @transform_1(%arg0: i32) -> (i32, i32) {
    %c0_i32 = arith.constant 0 : i32
    %c0_i32_0 = arith.constant 0 : i32
    %c0_i32_1 = arith.constant 0 : i32
    return %c0_i32, %c0_i32_0 : i32, i32
  }
  func.func @transform_2(%arg0: i32) -> (i32, i32) {
    %c0_i32 = arith.constant 0 : i32
    %c0_i32_0 = arith.constant 0 : i32
    %c0_i32_1 = arith.constant 0 : i32
    return %c0_i32, %c0_i32_0 : i32, i32
  }
  func.func @transform_3(%arg0: i32) -> (i32, i32) {
    %c0_i32 = arith.constant 0 : i32
    %c0_i32_0 = arith.constant 0 : i32
    %c0_i32_1 = arith.constant 0 : i32
    return %c0_i32, %c0_i32_0 : i32, i32
  }
  func.func @transform_4(%arg0: i32) -> (i32, i32) {
    %c0_i32 = arith.constant 0 : i32
    %c0_i32_0 = arith.constant 0 : i32
    return %arg0, %c0_i32 : i32, i32
  }
}

</mosaic_0001>

<bundles_post_ra>
// kernel: hnn_forward_prepared.1
= control target key start
LH: loop header
LB: loop body
LE: loop exit
PB: predicated region body
PF: predicated region fallthrough
CT: control target
= control target key end

     0   :  { %vm27_vm0 = vcmask 64512   ;;  %vm119_vm1 = vcmask 261120   ;;  %s308_s1 = inlined_call_operand.vmem [shape: f32[8,32], index: 1, kind: input, shape index: {}]   ;;  %s309_s0 = inlined_call_operand.vmem [shape: f32[16,8], index: 0, kind: input, shape index: {}]   ;;  %s310_s3 = inlined_call_operand.vmem [shape: f32[32,8], index: 3, kind: input, shape index: {}]   ;;  %s311_s2 = inlined_call_operand.vmem [shape: f32[1,32], index: 2, kind: input, shape index: {}]   ;;  %s312_s4 = inlined_call_operand.vmem [shape: f32[16,8], index: 4, kind: output, shape index: {}]  }
   0x1   :  { %v19_v0 = vld [vmem:[%s308_s1] sm:$0xff]  ;;  %v18_v2 = vld [vmem:[%s309_s0 + $0x8] sm:$0xff]  ;;  %v117_v6 = vld [vmem:[%s310_s3 + $0x10] sm:$0xff] }
   0x2   :  { %v17_v1 = vld [vmem:[%s309_s0] sm:$0xff]  ;;  %221 = vmatprep.subr.mxu0 %v19_v0  ;;  %v116_v4 = vld [vmem:[%s310_s3 + $0x8] sm:$0xff]  ;;  %v118_v7 = vld [vmem:[%s310_s3 + $0x18] sm:$0xff] }
   0x3   :  { %223 = vmatprep.mubr.msk.f32.mxu0 %vm27_vm0, %v17_v1  ;;  %222 = vmatpush3.msra.mxu0 %v19_v0  ;;  %v115_v3 = vld [vmem:[%s310_s3] sm:$0xff]  ;;  %v241_v8 = vpack.c.bf16 %v118_v7, %v117_v6 }
   0x4   :  { %224 = vmatmul.mubr.msk.f32.vlgmr.msra.gmra.mrb[0].mxu0 %vm27_vm0, %v18_v2  ;;  %v237_v5 = vpack.c.bf16 %v116_v4, %v115_v3  ;;  %v207_v9 = vld [vmem:[%s311_s2] ss:$0 sm:$0xff] }
   0x6   :  { %238 = vmatprep.subr.bf16.mxu1 %v237_v5 }
   0x7   :  { %240 = vmatpush3.bf16.msra.mxu1 %v237_v5 }
   0x8   :  { %242 = vmatprep.subr.bf16.mxu1 %v241_v8 }
   0xb   :  { %244 = vmatpush3.bf16.msra.mxu1 %v241_v8 }
  0xd7   :  { %v225_v10 = vpop.f32.mrb[0].mxu0 }
  0xd8   :  { %v106_v11 = vadd.f32 %v225_v10, %v207_v9  ;;  %v100_v12 = vpop.f32.mrb[1].mxu0 }
  0xd9   :  { %v101_v13 = vadd.f32 %v207_v9, %v100_v12 }
  0xda   :  { %245 = vtanh.f32 %v106_v11 }
  0xdb   :  { %247 = vtanh.f32 %v101_v13 }
  0xe4   :  { %v246_v14 = vpop.eup %245 }
  0xe5   :  { %v248_v15 = vpop.eup %247  ;;  %v112_v16 = vmul.f32 %v246_v14, %v246_v14 }
  0xe6   :  { %v111_v17 = vmul.f32 %v248_v15, %v248_v15 }
  0xe7   :  { %v114_v19 = vsub.f32 1.0, %v112_v16 }
  0xe8   :  { %v113_v18 = vsub.f32 1.0, %v111_v17 }
  0xea   :  { %234 = vmatprep.mubr.msk.f32.mxu1 %vm119_vm1, %v113_v18 }
  0xeb   :  { %235 = vmatmul.mubr.msk.f32.vlgmr.msra.gmra.mrb[0].mxu1 %vm119_vm1, %v114_v19 }
 0x1be   :  { %v236_v20 = vpop.f32.mrb[0].mxu1 }
 0x1bf   :  { %202 = vst.msk [vmem:[%s312_s4 + $0x8] sm:$0xff] %vm27_vm0, %v236_v20  ;;  %v192_v21 = vpop.f32.mrb[1].mxu1 }
 0x1c0   :  { %201 = vst.msk [vmem:[%s312_s4] sm:$0xff] %vm27_vm0, %v192_v21 }

</bundles_post_ra>
